<compile_context>
chip_gen: v6e
topology: v6e:2x2x1
jax: 0.10.0
libtpu: 0.0.40
codegen_flags: <defaults>
</compile_context>

<pallas_src>
import jax
import jax.numpy as jnp
from jax.experimental import pallas as pl
from jax.experimental.pallas import tpu as pltpu

_TARGET_BLOCK_B = 2048  # target batch-tile rows for large batches


def _pick_batch_tile(B, target=_TARGET_BLOCK_B):
    """Choose (bb, n_blocks) for the batch grid.

    - Small batches: one step (tiling only adds overhead).
    - Large batches: big tiles (amortize per-step pipeline overhead), at
      least 2 grid steps (v7x has 2 TensorCores), rounded to the bf16
      sublane multiple (16), and preferring a tile that divides B exactly
      so the wrapper never pads (padding = an extra HBM read+write of x).
    """
    if B <= target:
        return B, 1
    cap = max(16, (pl.cdiv(B, 2) // 16) * 16)   # >= 2 grid steps
    bb0 = min(target, cap)
    for bb in range(bb0, 255, -16):             # prefer an exact divisor of B
        if B % bb == 0:
            return bb, B // bb
    return bb0, pl.cdiv(B, bb0)                 # fall back to padded last tile


def pgnet_kernel(x_ref, w1_ref, wh_ref, b_ref, out_ref):
    """x_ref: (bb, S) bf16; w1_ref: (S, S) bf16; wh_ref: (S, A+1) bf16;
    b_ref: (1, S+A+1) f32 = [b1 | ba | bv]; out_ref: (bb, A+1) f32."""
    S = x_ref.shape[1]
    A = wh_ref.shape[1] - 1

    b = b_ref[...]                        # (1, S + A + 1) float32
    b1 = b[:, :S]                         # (1, S)
    bh = b[:, S:]                         # (1, A + 1)

    # Shared trunk: h = relu(x @ W1 + b1).  (The PyTorch forward evaluates
    # l1(state) twice but the value is identical -> compute once.)
    h = jnp.dot(x_ref[...], w1_ref[...],
                preferred_element_type=jnp.float32) + b1
    h = jnp.maximum(h, 0.0)                                    # (bb, S) f32

    # Fused heads: z[:, :A] are the action logits, z[:, A] is the value.
    z = jnp.dot(h.astype(jnp.bfloat16), wh_ref[...],
                preferred_element_type=jnp.float32) + bh       # (bb, A+1)

    # Masked, numerically stable softmax over the logit columns only; the
    # value column passes through untouched.  Working at the full (bb, A+1)
    # width keeps a single dense store (no lane concat / sub-slice stores).
    col = jax.lax.broadcasted_iota(jnp.int32, z.shape, 1)
    is_logit = col < A
    zl = jnp.where(is_logit, z, -jnp.inf)
    m = jnp.max(zl, axis=1, keepdims=True)
    e = jnp.exp(zl - m)                   # value column -> exp(-inf) = 0
    denom = jnp.sum(e, axis=1, keepdims=True)
    # Exact f32 divide: restores sum(probs) == 1 to f32 precision (the
    # approx EUP reciprocal gave no measurable speedup here and broke it).
    probs = e / denom

    out_ref[...] = jnp.where(is_logit, probs, z)


@jax.jit
def pgnet_forward(state, w1, b1, wa, ba, wv, bv):
    """Returns (probs, value) matching PGNet.forward.

    Weights are stored pre-transposed as (in_features, out_features),
    biases as (1, out_features)."""
    B, S = state.shape
    A = wa.shape[1]

    # --- wrapper-side packing (fuses into the surrounding jit) --------------
    w_heads = jnp.concatenate([wa, wv], axis=1)                # (S, A+1)
    b_packed = jnp.concatenate([b1, ba, bv], axis=1)           # (1, S+A+1) f32

    # bf16 MXU operands (also halves weight/activation DMA bytes).
    x_bf = state.astype(jnp.bfloat16)
    w1_bf = w1.astype(jnp.bfloat16)
    wh_bf = w_heads.astype(jnp.bfloat16)

    bb, n_blocks = _pick_batch_tile(B)
    Bp = n_blocks * bb
    if Bp != B:                           # only if no exact-divisor tile exists
        x_bf = jnp.pad(x_bf, ((0, Bp - B), (0, 0)))

    # Explicit VMEM budget for the chosen tile: double-buffered x and output
    # plus resident weights/biases (conservatively counted double-buffered),
    # with headroom.  Keeps large tiles legal on v5e's 16 MiB default scoped
    # VMEM and well inside v7x's 64 MiB physical VMEM.
    vmem_needed = (2 * bb * S * 2            # x tiles (bf16)
                   + 2 * bb * (A + 1) * 4    # out tiles (f32)
                   + 2 * S * S * 2           # W1 (bf16)
                   + 2 * S * (A + 1) * 2     # fused head W (bf16)
                   + 2 * (S + A + 1) * 4)    # packed biases (f32)
    vmem_limit = min(96 * 1024 * 1024,
                     max(32 * 1024 * 1024, int(1.5 * vmem_needed) + (1 << 20)))

    out = pl.pallas_call(
        pgnet_kernel,
        out_shape=jax.ShapeDtypeStruct((Bp, A + 1), jnp.float32),
        grid_spec=pltpu.PrefetchScalarGridSpec(
            num_scalar_prefetch=0,
            grid=(n_blocks,),
            in_specs=[
                pl.BlockSpec((bb, S), lambda i: (i, 0)),         # state tile
                pl.BlockSpec((S, S), lambda i: (0, 0)),          # W1 (resident)
                pl.BlockSpec((S, A + 1), lambda i: (0, 0)),      # fused-head W
                pl.BlockSpec((1, S + A + 1), lambda i: (0, 0)),  # packed biases
            ],
            out_specs=pl.BlockSpec((bb, A + 1), lambda i: (i, 0)),
        ),
        compiler_params=pltpu.CompilerParams(
            dimension_semantics=("parallel",),  # batch axis -> both TCs on v7x
            vmem_limit_bytes=vmem_limit,
        ),
    )(x_bf, w1_bf, wh_bf, b_packed)

    probs = out[:B, :A]
    value = out[:B, A:]
    return probs, value


def init_linear_params(key, fan_in, fan_out):
    """Deterministic init mimicking PyTorch nn.Linear default (U(-k, k),
    k=1/sqrt(fan_in)). Weight stored transposed as (fan_in, fan_out)."""
    k = 1.0 / jnp.sqrt(jnp.float32(fan_in))
    kw, kb = jax.random.split(key)
    w = jax.random.uniform(kw, (fan_in, fan_out), jnp.float32, minval=-k, maxval=k)
    b = jax.random.uniform(kb, (1, fan_out), jnp.float32, minval=-k, maxval=k)
    return w, b


if __name__ == "__main__":
    # Small shapes consistent with the module: batch=8, state_size=32, action_size=8.
    # TODO(synk): get_action (Categorical sampling) and train() are host-side
    # RL bookkeeping, not part of the forward pass, and are not kernelized.
    B, S, A = 8, 32, 8

    key = jax.random.PRNGKey(0)
    k_x, k_l1, k_ah, k_vh = jax.random.split(key, 4)

    state = jax.random.normal(k_x, (B, S), jnp.float32)
    w1, b1 = init_linear_params(k_l1, S, S)   # l1: Linear(S, S)
    wa, ba = init_linear_params(k_ah, S, A)   # action_head: Linear(S, A)
    wv, bv = init_linear_params(k_vh, S, 1)   # value_head: Linear(S, 1)

    probs, value = pgnet_forward(state, w1, b1, wa, ba, wv, bv)
    jax.block_until_ready((probs, value))

    # Pure-JAX f32 reference (same math as the PyTorch forward).
    h_ref = jnp.maximum(state @ w1 + b1, 0.0)
    probs_ref = jax.nn.softmax(h_ref @ wa + ba, axis=1)
    value_ref = h_ref @ wv + bv

    # bf16 MXU operands => slightly looser tolerance than a pure-f32 path
    # (precision choice, not a semantic change).  Softmax normalization is
    # exact in f32, so sum(probs) == 1 holds tightly.
    assert probs.shape == (B, A) and value.shape == (B, 1)
    assert jnp.allclose(probs, probs_ref, atol=2e-2, rtol=2e-2), "probs mismatch"
    assert jnp.allclose(value, value_ref, atol=2e-2, rtol=2e-2), "value mismatch"
    assert jnp.allclose(jnp.sum(probs, axis=1), 1.0, atol=1e-5), "probs not normalized"

    print("KERNEL_OK")
</pallas_src>

<mosaic_0001>
module attributes {stable_mosaic.version = 11 : i64} {
  func.func @pgnet_kernel(%arg0: i32, %arg1: memref<8x32xbf16, #tpu.memory_space<vmem>>, %arg2: memref<32x32xbf16, #tpu.memory_space<vmem>>, %arg3: memref<32x9xbf16, #tpu.memory_space<vmem>>, %arg4: memref<1x41xf32, #tpu.memory_space<vmem>>, %arg5: memref<8x9xf32, #tpu.memory_space<vmem>>) attributes {dimension_semantics = [#tpu.dimension_semantics<parallel>], iteration_bounds = array<i64: 1>, scalar_prefetch = 0 : i64, scratch_operands = 0 : i64, tpu.core_type = #tpu.core_type<tc>, window_params = [{transform_indices = @transform_0, window_bounds = array<i64: 8, 32>}, {pipeline_mode = #tpu.pipeline_mode<synchronous>, transform_indices = @transform_1, window_bounds = array<i64: 32, 32>}, {pipeline_mode = #tpu.pipeline_mode<synchronous>, transform_indices = @transform_2, window_bounds = array<i64: 32, 9>}, {pipeline_mode = #tpu.pipeline_mode<synchronous>, transform_indices = @transform_3, window_bounds = array<i64: 1, 41>}, {transform_indices = @transform_4, window_bounds = array<i64: 8, 9>}]} {
    %c0 = arith.constant 0 : index
    %c0_0 = arith.constant 0 : index
    %0 = vector.load %arg4[%c0, %c0_0] : memref<1x41xf32, #tpu.memory_space<vmem>>, vector<1x41xf32>
    %1 = vector.extract_strided_slice %0 {offsets = [0, 0], sizes = [1, 32], strides = [1, 1]} : vector<1x41xf32> to vector<1x32xf32>
    %2 = vector.extract_strided_slice %0 {offsets = [0, 32], sizes = [1, 9], strides = [1, 1]} : vector<1x41xf32> to vector<1x9xf32>
    %c0_1 = arith.constant 0 : index
    %c0_2 = arith.constant 0 : index
    %3 = vector.load %arg1[%c0_1, %c0_2] : memref<8x32xbf16, #tpu.memory_space<vmem>>, vector<8x32xbf16>
    %c0_3 = arith.constant 0 : index
    %c0_4 = arith.constant 0 : index
    %4 = vector.load %arg2[%c0_3, %c0_4] : memref<32x32xbf16, #tpu.memory_space<vmem>>, vector<32x32xbf16>
    %cst = arith.constant dense<0.000000e+00> : vector<8x32xf32>
    %5 = tpu.matmul %3, %4, %cst {dimension_numbers = #tpu.dot_dimension_numbers<[1], [0], [0], [1], [0, 0, 1, 1], [], []>} : vector<8x32xbf16>, vector<32x32xbf16>, vector<8x32xf32> -> vector<8x32xf32>
    %6 = vector.broadcast %1 : vector<1x32xf32> to vector<8x32xf32>
    %7 = arith.addf %5, %6 : vector<8x32xf32>
    %cst_5 = arith.constant 0.000000e+00 : f32
    %8 = vector.broadcast %cst_5 : f32 to vector<8x32xf32>
    %9 = arith.maximumf %7, %8 : vector<8x32xf32>
    %10 = arith.truncf %9 : vector<8x32xf32> to vector<8x32xbf16>
    %c0_6 = arith.constant 0 : index
    %c0_7 = arith.constant 0 : index
    %11 = vector.load %arg3[%c0_6, %c0_7] : memref<32x9xbf16, #tpu.memory_space<vmem>>, vector<32x9xbf16>
    %cst_8 = arith.constant dense<0.000000e+00> : vector<8x9xf32>
    %12 = tpu.matmul %10, %11, %cst_8 {dimension_numbers = #tpu.dot_dimension_numbers<[1], [0], [0], [1], [0, 0, 1, 1], [], []>} : vector<8x32xbf16>, vector<32x9xbf16>, vector<8x9xf32> -> vector<8x9xf32>
    %13 = vector.broadcast %2 : vector<1x9xf32> to vector<8x9xf32>
    %14 = arith.addf %12, %13 : vector<8x9xf32>
    %15 = tpu.iota {dimensions = array<i32: 1>} : vector<8x9xi32>
    %c8_i32 = arith.constant 8 : i32
    %16 = vector.broadcast %c8_i32 : i32 to vector<8x9xi32>
    %17 = arith.cmpi slt, %15, %16 : vector<8x9xi32>
    %cst_9 = arith.constant 0xFF800000 : f32
    %18 = vector.broadcast %cst_9 : f32 to vector<8x9xf32>
    %19 = arith.select %17, %14, %18 : vector<8x9xi1>, vector<8x9xf32>
    %cst_10 = arith.constant dense<0xFF800000> : vector<8xf32>
    %20 = vector.multi_reduction <maximumf>, %19, %cst_10 [1] : vector<8x9xf32> to vector<8xf32>
    %21 = vector.shape_cast %20 : vector<8xf32> to vector<8x1xf32>
    %22 = vector.broadcast %21 : vector<8x1xf32> to vector<8x9xf32>
    %23 = arith.subf %19, %22 : vector<8x9xf32>
    %24 = math.exp %23 : vector<8x9xf32>
    %cst_11 = arith.constant dense<0.000000e+00> : vector<8xf32>
    %25 = vector.multi_reduction <add>, %24, %cst_11 [1] : vector<8x9xf32> to vector<8xf32>
    %26 = vector.shape_cast %25 : vector<8xf32> to vector<8x1xf32>
    %27 = vector.broadcast %26 : vector<8x1xf32> to vector<8x9xf32>
    %28 = arith.divf %24, %27 : vector<8x9xf32>
    %29 = arith.select %17, %28, %14 : vector<8x9xi1>, vector<8x9xf32>
    %c0_12 = arith.constant 0 : index
    %c0_13 = arith.constant 0 : index
    %30 = vector.load %arg5[%c0_12, %c0_13] : memref<8x9xf32, #tpu.memory_space<vmem>>, vector<8x9xf32>
    tpu.vector_store %arg5[%c0_12, %c0_13], %29 {strides = array<i32>} : memref<8x9xf32, #tpu.memory_space<vmem>>, vector<8x9xf32>,
    return
  }
  func.func @transform_0(%arg0: i32) -> (i32, i32) {
    %c0_i32 = arith.constant 0 : i32
    %c0_i32_0 = arith.constant 0 : i32
    return %arg0, %c0_i32 : i32, i32
  }
  func.func @transform_1(%arg0: i32) -> (i32, i32) {
    %c0_i32 = arith.constant 0 : i32
    %c0_i32_0 = arith.constant 0 : i32
    %c0_i32_1 = arith.constant 0 : i32
    return %c0_i32, %c0_i32_0 : i32, i32
  }
  func.func @transform_2(%arg0: i32) -> (i32, i32) {
    %c0_i32 = arith.constant 0 : i32
    %c0_i32_0 = arith.constant 0 : i32
    %c0_i32_1 = arith.constant 0 : i32
    return %c0_i32, %c0_i32_0 : i32, i32
  }
  func.func @transform_3(%arg0: i32) -> (i32, i32) {
    %c0_i32 = arith.constant 0 : i32
    %c0_i32_0 = arith.constant 0 : i32
    %c0_i32_1 = arith.constant 0 : i32
    return %c0_i32, %c0_i32_0 : i32, i32
  }
  func.func @transform_4(%arg0: i32) -> (i32, i32) {
    %c0_i32 = arith.constant 0 : i32
    %c0_i32_0 = arith.constant 0 : i32
    return %arg0, %c0_i32 : i32, i32
  }
}

</mosaic_0001>

<bundles_post_ra>
// kernel: pgnet_forward.1
= control target key start
LH: loop header
LB: loop body
LE: loop exit
PB: predicated region body
PF: predicated region fallthrough
CT: control target
= control target key end

     0   :  { %v212_v0 = vmov 0.0   ;;  %vm213_vm0 = vmmov 0   ;;  %vm42_vm1 = vcmask 261120   ;;  %s214_s26 = smov 96   ;;  %v150_v14 = vlaneseq  ;;  %s268_s1 = inlined_call_operand.vmem [shape: bf16[32,32], index: 1, kind: input, shape index: {}]   ;;  %s269_s0 = inlined_call_operand.vmem [shape: bf16[8,32], index: 0, kind: input, shape index: {}]   ;;  %s270_s2 = inlined_call_operand.vmem [shape: bf16[32,9], index: 2, kind: input, shape index: {}]   ;;  %s271_s3 = inlined_call_operand.vmem [shape: f32[1,41], index: 3, kind: input, shape index: {}]   ;;  %s272_s4 = inlined_call_operand.vmem [shape: f32[8,9], index: 4, kind: output, shape index: {}]  }
   0x1   :  { %185 = vmatprep.subr.bf16.mxu0 %v212_v0  ;;  %v204_v1 = vld [vmem:[%s268_s1 + $0x8] sm:$0xff]   ;;  %189 = vmatprep.mubr.msk.bf16.mxu0 %vm213_vm0, %v212_v0  ;;  %v205_v2 = vld [vmem:[%s268_s1] sm:$0xff]   ;;  %vm154_vm3 = vcmask 72704  }
   0x2   :  { %193 = vmatprep.subr.bf16.mxu1 %v212_v0  ;;  %197 = vmatprep.mubr.msk.bf16.mxu1 %vm213_vm0, %v212_v0  ;;  %v19_v3 = vld [vmem:[%s269_s0] sm:$0xf]  ;;  %v206_v4 = vld [vmem:[%s270_s2 + $0x8] sm:$0xff]   ;;  %v151_v15 = vand.u32 127, %v150_v14 }
   0x3   :  { %186 = vmatpush3.bf16.msra.mxu0 %v204_v1  ;;  %194 = vmatpush3.bf16.msra.mxu1 %v206_v4  ;;  %v207_v5 = vld [vmem:[%s270_s2] sm:$0xff]  }
   0x4   :  { %187 = vmatprep.subr.bf16.mxu0 %v212_v0  ;;  %195 = vmatprep.subr.bf16.mxu1 %v212_v0  ;;  %v172_v6 = vld [vmem:[%s271_s3] ss:$0 sm:$0xff]  ;;  %vm152_vm2 = vcmp.lt.s32.totalorder %v151_v15, 8 }
   0x5   :  { %104 = vrot.lane.b32.xlu0 %v172_v6, %s214_s26 }
   0x7   :  { %188 = vmatpush3.bf16.msra.mxu0 %v205_v2  ;;  %196 = vmatpush3.bf16.msra.mxu1 %v207_v5 }
   0xa   :  { %190 = vmatmul.mubr.msk.bf16.vlgmr.msra.gmra.mxu0 %vm42_vm1, %v19_v3 }
  0x77   :  { %v105_v16 = vpop.permute.xlu0 %104 }
  0xca   :  { %v80_v7 = vpop.f32.mrf.mxu0 }
  0xcb   :  { %v81_v8 = vadd.f32 %v172_v6, %v80_v7 }
  0xcc   :  { %v191_v9 = vpop.f32.mrf.mxu0 }
  0xcd   :  { %v86_v10 = vmax.f32 %v81_v8, 0.0 }
  0xce   :  { %v83_v11 = vpop.f32.mrf.mxu0 }
  0xcf   :  { %v87_v12 = vpack.c.bf16 %v86_v10, %v86_v10 }
  0xd0   :  { %v192_v13 = vpop.f32.mrf.mxu0 }
  0xd1   :  { %198 = vmatmul.mubr.msk.bf16.vlgmr.msra.gmra.mxu1 %vm42_vm1, %v87_v12 }
 0x191   :  { %v144_v17 = vpop.f32.mrf.mxu1 }
 0x192   :  { %v145_v18 = vadd.f32 %v144_v17, %v105_v16 }
 0x193   :  { %v199_v19 = vpop.f32.mrf.mxu1 }
 0x194   :  { %v153_v20 = vsel %vm152_vm2, %v145_v18, -inf }
 0x195   :  { %v147_v21 = vpop.f32.mrf.mxu1  ;;  %v155_v22 = vsel %vm154_vm3, %v153_v20, -inf }
 0x196   :  { %156 = vmax.xlane.f32.xlu0 %v155_v22 }
 0x197   :  { %v200_v23 = vpop.f32.mrf.mxu1 }
 0x21f   :  { %v157_v24 = vpop.xlane.xlu0 %156 }
 0x220   :  { %v158_v25 = vsub.f32 %v153_v20, %v157_v24 }
 0x222   :  { %v159_v26 = vmul.f32 1.442695, %v158_v25 }
 0x224   :  { %208 = vpow2.f32 %v159_v26 }
 0x231   :  { %v209_v27 = vpop.eup %208 }
 0x232   :  { %v161_v28 = vsel %vm154_vm3, %v209_v27, 0.0 }
 0x233   :  { %162 = vadd.xlane.f32.xlu1 %v161_v28 }
 0x2bc   :  { %v163_v29 = vpop.xlane.xlu1 %162 }
 0x2bd   :  { %210 = vrcp.f32 %v163_v29 }
 0x2ca   :  { %v211_v30 = vpop.eup %210 }
 0x2cb   :  { %v165_v31 = vmul.f32 %v211_v30, %v209_v27 }
 0x2cd   :  { %v166_v32 = vsel %vm152_vm2, %v165_v31, %v145_v18 }
 0x2ce   :  { %167 = vst.msk [vmem:[%s272_s4] sm:$0xff] %vm154_vm3, %v166_v32 }

</bundles_post_ra>
